<compile_context>
chip_gen: v5e
topology: v5e:2x2
jax: 0.10.0
libtpu: 0.0.40
codegen_flags: <defaults>
</compile_context>

<pallas_src>
import math

import jax
import jax.numpy as jnp
from jax.experimental import pallas as pl
from jax.experimental.pallas import tpu as pltpu

HIDDEN = 64
FREQ_DIM = 256          # frequency_embedding_size
HALF = FREQ_DIM // 2    # 128
NET_DIM = 128           # concat(hx, ht) width
OUT_DIM = 2
MAX_TILE = 512          # batch rows per grid step (fits VMEM with big margin)


def model_kernel(x_ref, t_ref, freqs_ref,
                 wx_ref, bx_ref,
                 wt1_ref, bt1_ref, wt2_ref, bt2_ref,
                 wm_ref, bm_ref, wo_ref, bo_ref,
                 out_ref):
    x = x_ref[...]            # [TB, 2]
    t = t_ref[...]            # [TB, 1]
    freqs = freqs_ref[...]    # [1, HALF]

    # in_x branch: Linear(2, 64). K=2 contraction -> two broadcast FMAs on the
    # VPU instead of a sublane-padded MXU matmul.
    hx = (x[:, 0:1] * wx_ref[0:1, :]
          + x[:, 1:2] * wx_ref[1:2, :]
          + bx_ref[...])                                            # [TB, 64]

    # Timestep embedding. cat([cos, sin]) @ wt1 == cos @ wt1[:H] + sin @ wt1[H:]
    # -> no [TB, 256] concat materialization.
    args = t * freqs                                                # [TB, 128]
    cos_p = jnp.cos(args)
    sin_p = jnp.sin(args)
    ht = (jnp.dot(cos_p, wt1_ref[0:HALF, :],
                  preferred_element_type=jnp.float32)
          + jnp.dot(sin_p, wt1_ref[HALF:FREQ_DIM, :],
                    preferred_element_type=jnp.float32)
          + bt1_ref[...])                                           # [TB, 64]
    ht = ht * jax.nn.sigmoid(ht)                                    # SiLU
    ht = jnp.dot(ht, wt2_ref[...],
                 preferred_element_type=jnp.float32) + bt2_ref[...]

    # net: the python list [Linear(128,128), SiLU()] * 5 repeats the SAME
    # module -> shared weights applied 5 times, then Linear(128, 2).
    # Hoist the shared weight/bias loads out of the unrolled loop.
    wm = wm_ref[...]                                                # [128, 128]
    bm = bm_ref[...]                                                # [1, 128]

    # First shared layer fused with the concat([hx, ht]) split -> no [TB, 128]
    # concat materialization.
    h = (jnp.dot(hx, wm[0:HIDDEN, :], preferred_element_type=jnp.float32)
         + jnp.dot(ht, wm[HIDDEN:NET_DIM, :], preferred_element_type=jnp.float32)
         + bm)
    h = h * jax.nn.sigmoid(h)

    for _ in range(4):
        h = jnp.dot(h, wm, preferred_element_type=jnp.float32) + bm
        h = h * jax.nn.sigmoid(h)

    out = jnp.dot(h, wo_ref[...], preferred_element_type=jnp.float32) + bo_ref[...]
    out_ref[...] = out.astype(out_ref.dtype)


def init_params(key):
    """Deterministic init mimicking torch.nn.Linear default (uniform +-1/sqrt(fan_in)).
    Weights are stored as [in, out] (already transposed)."""
    def linear(key, fan_in, fan_out):
        kw, kb = jax.random.split(key)
        bound = 1.0 / math.sqrt(fan_in)
        w = jax.random.uniform(kw, (fan_in, fan_out), jnp.float32, -bound, bound)
        b = jax.random.uniform(kb, (1, fan_out), jnp.float32, -bound, bound)
        return w, b

    keys = jax.random.split(key, 5)
    wx, bx = linear(keys[0], 2, HIDDEN)              # in_x
    wt1, bt1 = linear(keys[1], FREQ_DIM, HIDDEN)     # in_t.mlp[0]
    wt2, bt2 = linear(keys[2], HIDDEN, HIDDEN)       # in_t.mlp[2]
    wm, bm = linear(keys[3], NET_DIM, NET_DIM)       # shared hidden Linear (x5)
    wo, bo = linear(keys[4], NET_DIM, OUT_DIM)       # final Linear(128, 2)

    freqs = jnp.exp(
        -math.log(10000.0) * jnp.arange(HALF, dtype=jnp.float32) / HALF
    ).reshape(1, HALF)

    return dict(wx=wx, bx=bx, wt1=wt1, bt1=bt1, wt2=wt2, bt2=bt2,
                wm=wm, bm=bm, wo=wo, bo=bo, freqs=freqs)


def _round_up(n, m):
    return ((n + m - 1) // m) * m


@jax.jit
def model_forward(params, x, t):
    B = x.shape[0]
    x = x.astype(jnp.float32)
    t2d = t.astype(jnp.float32).reshape(B, 1)

    # Pick batch tile: pad B to a multiple of the sublane tile (8 for f32);
    # cap the tile so large batches stream through the pipeline.
    tb = _round_up(B, 8) if B <= MAX_TILE else MAX_TILE
    b_pad = _round_up(B, tb)
    if b_pad != B:
        x = jnp.pad(x, ((0, b_pad - B), (0, 0)))
        t2d = jnp.pad(t2d, ((0, b_pad - B), (0, 0)))

    grid = (b_pad // tb,)

    def row_spec(c):
        return pl.BlockSpec((tb, c), lambda i: (i, 0))

    def const_spec(shape):
        return pl.BlockSpec(shape, lambda i: (0, 0))

    in_specs = [
        row_spec(2),                       # x
        row_spec(1),                       # t
        const_spec((1, HALF)),             # freqs
        const_spec((2, HIDDEN)),           # wx
        const_spec((1, HIDDEN)),           # bx
        const_spec((FREQ_DIM, HIDDEN)),    # wt1
        const_spec((1, HIDDEN)),           # bt1
        const_spec((HIDDEN, HIDDEN)),      # wt2
        const_spec((1, HIDDEN)),           # bt2
        const_spec((NET_DIM, NET_DIM)),    # wm (shared)
        const_spec((1, NET_DIM)),          # bm
        const_spec((NET_DIM, OUT_DIM)),    # wo
        const_spec((1, OUT_DIM)),          # bo
    ]

    out = pl.pallas_call(
        model_kernel,
        out_shape=jax.ShapeDtypeStruct((b_pad, OUT_DIM), jnp.float32),
        grid=grid,
        in_specs=in_specs,
        out_specs=row_spec(OUT_DIM),
        compiler_params=pltpu.CompilerParams(
            dimension_semantics=("parallel",),
            vmem_limit_bytes=48 * 1024 * 1024,   # safe on v7x's 64 MiB VMEM
        ),
    )(x, t2d, params["freqs"],
      params["wx"], params["bx"],
      params["wt1"], params["bt1"], params["wt2"], params["bt2"],
      params["wm"], params["bm"], params["wo"], params["bo"])

    return out[:B]


def model_forward_ref(params, x, t):
    """Pure-JAX reference (mirrors the PyTorch module) for sanity checking."""
    B = x.shape[0]
    t2d = t.astype(jnp.float32).reshape(B, 1)
    hx = x @ params["wx"] + params["bx"]
    args = t2d * params["freqs"]
    emb = jnp.concatenate([jnp.cos(args), jnp.sin(args)], axis=-1)
    ht = emb @ params["wt1"] + params["bt1"]
    ht = ht * jax.nn.sigmoid(ht)
    ht = ht @ params["wt2"] + params["bt2"]
    h = jnp.concatenate([hx, ht], axis=-1)
    for _ in range(5):
        h = h @ params["wm"] + params["bm"]
        h = h * jax.nn.sigmoid(h)
    return h @ params["wo"] + params["bo"]


if __name__ == "__main__":
    key = jax.random.PRNGKey(0)
    kp, kx, kt, kx2, kt2 = jax.random.split(key, 5)

    params = init_params(kp)

    # Small test (single grid step).
    B = 8
    x = jax.random.normal(kx, (B, 2), dtype=jnp.float32)
    t = jax.random.uniform(kt, (B,), dtype=jnp.float32) * 1000.0
    out = jax.block_until_ready(model_forward(params, x, t))
    ref = model_forward_ref(params, x, t)
    assert out.shape == (B, OUT_DIM)
    assert jnp.allclose(out, ref, atol=1e-4, rtol=1e-4), "mismatch vs pure-JAX reference (B=8)"

    # Ragged, multi-tile test (exercises grid + batch padding path).
    B2 = 600
    x2 = jax.random.normal(kx2, (B2, 2), dtype=jnp.float32)
    t2 = jax.random.uniform(kt2, (B2,), dtype=jnp.float32) * 1000.0
    out2 = jax.block_until_ready(model_forward(params, x2, t2))
    ref2 = model_forward_ref(params, x2, t2)
    assert out2.shape == (B2, OUT_DIM)
    assert jnp.allclose(out2, ref2, atol=1e-4, rtol=1e-4), "mismatch vs pure-JAX reference (B=600)"

    print("KERNEL_OK")
</pallas_src>

<mosaic_0001>
module attributes {stable_mosaic.version = 11 : i64} {
  func.func @model_kernel(%arg0: i32, %arg1: memref<8x2xf32, #tpu.memory_space<vmem>>, %arg2: memref<8x1xf32, #tpu.memory_space<vmem>>, %arg3: memref<1x128xf32, #tpu.memory_space<vmem>>, %arg4: memref<2x64xf32, #tpu.memory_space<vmem>>, %arg5: memref<1x64xf32, #tpu.memory_space<vmem>>, %arg6: memref<256x64xf32, #tpu.memory_space<vmem>>, %arg7: memref<1x64xf32, #tpu.memory_space<vmem>>, %arg8: memref<64x64xf32, #tpu.memory_space<vmem>>, %arg9: memref<1x64xf32, #tpu.memory_space<vmem>>, %arg10: memref<128x128xf32, #tpu.memory_space<vmem>>, %arg11: memref<1x128xf32, #tpu.memory_space<vmem>>, %arg12: memref<128x2xf32, #tpu.memory_space<vmem>>, %arg13: memref<1x2xf32, #tpu.memory_space<vmem>>, %arg14: memref<8x2xf32, #tpu.memory_space<vmem>>) attributes {dimension_semantics = [#tpu.dimension_semantics<parallel>], iteration_bounds = array<i64: 1>, scalar_prefetch = 0 : i64, scratch_operands = 0 : i64, tpu.core_type = #tpu.core_type<tc>, window_params = [{transform_indices = @transform_0, window_bounds = array<i64: 8, 2>}, {transform_indices = @transform_1, window_bounds = array<i64: 8, 1>}, {pipeline_mode = #tpu.pipeline_mode<synchronous>, transform_indices = @transform_2, window_bounds = array<i64: 1, 128>}, {pipeline_mode = #tpu.pipeline_mode<synchronous>, transform_indices = @transform_3, window_bounds = array<i64: 2, 64>}, {pipeline_mode = #tpu.pipeline_mode<synchronous>, transform_indices = @transform_4, window_bounds = array<i64: 1, 64>}, {pipeline_mode = #tpu.pipeline_mode<synchronous>, transform_indices = @transform_5, window_bounds = array<i64: 256, 64>}, {pipeline_mode = #tpu.pipeline_mode<synchronous>, transform_indices = @transform_6, window_bounds = array<i64: 1, 64>}, {pipeline_mode = #tpu.pipeline_mode<synchronous>, transform_indices = @transform_7, window_bounds = array<i64: 64, 64>}, {pipeline_mode = #tpu.pipeline_mode<synchronous>, transform_indices = @transform_8, window_bounds = array<i64: 1, 64>}, {pipeline_mode = #tpu.pipeline_mode<synchronous>, transform_indices = @transform_9, window_bounds = array<i64: 128, 128>}, {pipeline_mode = #tpu.pipeline_mode<synchronous>, transform_indices = @transform_10, window_bounds = array<i64: 1, 128>}, {pipeline_mode = #tpu.pipeline_mode<synchronous>, transform_indices = @transform_11, window_bounds = array<i64: 128, 2>}, {pipeline_mode = #tpu.pipeline_mode<synchronous>, transform_indices = @transform_12, window_bounds = array<i64: 1, 2>}, {transform_indices = @transform_13, window_bounds = array<i64: 8, 2>}]} {
    %c0 = arith.constant 0 : index
    %c0_0 = arith.constant 0 : index
    %0 = vector.load %arg1[%c0, %c0_0] : memref<8x2xf32, #tpu.memory_space<vmem>>, vector<8x2xf32>
    %c0_1 = arith.constant 0 : index
    %c0_2 = arith.constant 0 : index
    %1 = vector.load %arg2[%c0_1, %c0_2] : memref<8x1xf32, #tpu.memory_space<vmem>>, vector<8x1xf32>
    %c0_3 = arith.constant 0 : index
    %c0_4 = arith.constant 0 : index
    %2 = vector.load %arg3[%c0_3, %c0_4] : memref<1x128xf32, #tpu.memory_space<vmem>>, vector<1x128xf32>
    %3 = vector.extract_strided_slice %0 {offsets = [0, 0], sizes = [8, 1], strides = [1, 1]} : vector<8x2xf32> to vector<8x1xf32>
    %c0_5 = arith.constant 0 : index
    %c0_6 = arith.constant 0 : index
    %4 = vector.load %arg4[%c0_5, %c0_6] : memref<2x64xf32, #tpu.memory_space<vmem>>, vector<1x64xf32>
    %5 = vector.broadcast %3 : vector<8x1xf32> to vector<8x64xf32>
    %6 = vector.broadcast %4 : vector<1x64xf32> to vector<8x64xf32>
    %7 = arith.mulf %5, %6 : vector<8x64xf32>
    %8 = vector.extract_strided_slice %0 {offsets = [0, 1], sizes = [8, 1], strides = [1, 1]} : vector<8x2xf32> to vector<8x1xf32>
    %c1 = arith.constant 1 : index
    %c0_7 = arith.constant 0 : index
    %9 = vector.load %arg4[%c1, %c0_7] : memref<2x64xf32, #tpu.memory_space<vmem>>, vector<1x64xf32>
    %10 = vector.broadcast %8 : vector<8x1xf32> to vector<8x64xf32>
    %11 = vector.broadcast %9 : vector<1x64xf32> to vector<8x64xf32>
    %12 = arith.mulf %10, %11 : vector<8x64xf32>
    %13 = arith.addf %7, %12 : vector<8x64xf32>
    %c0_8 = arith.constant 0 : index
    %c0_9 = arith.constant 0 : index
    %14 = vector.load %arg5[%c0_8, %c0_9] : memref<1x64xf32, #tpu.memory_space<vmem>>, vector<1x64xf32>
    %15 = vector.broadcast %14 : vector<1x64xf32> to vector<8x64xf32>
    %16 = arith.addf %13, %15 : vector<8x64xf32>
    %17 = vector.broadcast %1 : vector<8x1xf32> to vector<8x128xf32>
    %18 = vector.broadcast %2 : vector<1x128xf32> to vector<8x128xf32>
    %19 = arith.mulf %17, %18 : vector<8x128xf32>
    %20 = math.cos %19 : vector<8x128xf32>
    %21 = math.sin %19 : vector<8x128xf32>
    %c0_10 = arith.constant 0 : index
    %c0_11 = arith.constant 0 : index
    %22 = vector.load %arg6[%c0_10, %c0_11] : memref<256x64xf32, #tpu.memory_space<vmem>>, vector<128x64xf32>
    %cst = arith.constant dense<0.000000e+00> : vector<8x64xf32>
    %23 = tpu.matmul %20, %22, %cst {dimension_numbers = #tpu.dot_dimension_numbers<[1], [0], [0], [1], [0, 0, 1, 1], [], []>} : vector<8x128xf32>, vector<128x64xf32>, vector<8x64xf32> -> vector<8x64xf32>
    %c128 = arith.constant 128 : index
    %c0_12 = arith.constant 0 : index
    %24 = vector.load %arg6[%c128, %c0_12] : memref<256x64xf32, #tpu.memory_space<vmem>>, vector<128x64xf32>
    %cst_13 = arith.constant dense<0.000000e+00> : vector<8x64xf32>
    %25 = tpu.matmul %21, %24, %cst_13 {dimension_numbers = #tpu.dot_dimension_numbers<[1], [0], [0], [1], [0, 0, 1, 1], [], []>} : vector<8x128xf32>, vector<128x64xf32>, vector<8x64xf32> -> vector<8x64xf32>
    %26 = arith.addf %23, %25 : vector<8x64xf32>
    %c0_14 = arith.constant 0 : index
    %c0_15 = arith.constant 0 : index
    %27 = vector.load %arg7[%c0_14, %c0_15] : memref<1x64xf32, #tpu.memory_space<vmem>>, vector<1x64xf32>
    %28 = vector.broadcast %27 : vector<1x64xf32> to vector<8x64xf32>
    %29 = arith.addf %26, %28 : vector<8x64xf32>
    %30 = arith.negf %29 : vector<8x64xf32>
    %31 = math.exp %30 : vector<8x64xf32>
    %cst_16 = arith.constant 1.000000e+00 : f32
    %32 = vector.broadcast %cst_16 : f32 to vector<8x64xf32>
    %33 = arith.addf %32, %31 : vector<8x64xf32>
    %34 = arith.divf %32, %33 : vector<8x64xf32>
    %35 = arith.mulf %29, %34 : vector<8x64xf32>
    %c0_17 = arith.constant 0 : index
    %c0_18 = arith.constant 0 : index
    %36 = vector.load %arg8[%c0_17, %c0_18] : memref<64x64xf32, #tpu.memory_space<vmem>>, vector<64x64xf32>
    %cst_19 = arith.constant dense<0.000000e+00> : vector<8x64xf32>
    %37 = tpu.matmul %35, %36, %cst_19 {dimension_numbers = #tpu.dot_dimension_numbers<[1], [0], [0], [1], [0, 0, 1, 1], [], []>} : vector<8x64xf32>, vector<64x64xf32>, vector<8x64xf32> -> vector<8x64xf32>
    %c0_20 = arith.constant 0 : index
    %c0_21 = arith.constant 0 : index
    %38 = vector.load %arg9[%c0_20, %c0_21] : memref<1x64xf32, #tpu.memory_space<vmem>>, vector<1x64xf32>
    %39 = vector.broadcast %38 : vector<1x64xf32> to vector<8x64xf32>
    %40 = arith.addf %37, %39 : vector<8x64xf32>
    %c0_22 = arith.constant 0 : index
    %c0_23 = arith.constant 0 : index
    %41 = vector.load %arg10[%c0_22, %c0_23] : memref<128x128xf32, #tpu.memory_space<vmem>>, vector<128x128xf32>
    %c0_24 = arith.constant 0 : index
    %c0_25 = arith.constant 0 : index
    %42 = vector.load %arg11[%c0_24, %c0_25] : memref<1x128xf32, #tpu.memory_space<vmem>>, vector<1x128xf32>
    %43 = vector.extract_strided_slice %41 {offsets = [0, 0], sizes = [64, 128], strides = [1, 1]} : vector<128x128xf32> to vector<64x128xf32>
    %cst_26 = arith.constant dense<0.000000e+00> : vector<8x128xf32>
    %44 = tpu.matmul %16, %43, %cst_26 {dimension_numbers = #tpu.dot_dimension_numbers<[1], [0], [0], [1], [0, 0, 1, 1], [], []>} : vector<8x64xf32>, vector<64x128xf32>, vector<8x128xf32> -> vector<8x128xf32>
    %45 = vector.extract_strided_slice %41 {offsets = [64, 0], sizes = [64, 128], strides = [1, 1]} : vector<128x128xf32> to vector<64x128xf32>
    %cst_27 = arith.constant dense<0.000000e+00> : vector<8x128xf32>
    %46 = tpu.matmul %40, %45, %cst_27 {dimension_numbers = #tpu.dot_dimension_numbers<[1], [0], [0], [1], [0, 0, 1, 1], [], []>} : vector<8x64xf32>, vector<64x128xf32>, vector<8x128xf32> -> vector<8x128xf32>
    %47 = arith.addf %44, %46 : vector<8x128xf32>
    %48 = vector.broadcast %42 : vector<1x128xf32> to vector<8x128xf32>
    %49 = arith.addf %47, %48 : vector<8x128xf32>
    %50 = arith.negf %49 : vector<8x128xf32>
    %51 = math.exp %50 : vector<8x128xf32>
    %cst_28 = arith.constant 1.000000e+00 : f32
    %52 = vector.broadcast %cst_28 : f32 to vector<8x128xf32>
    %53 = arith.addf %52, %51 : vector<8x128xf32>
    %54 = arith.divf %52, %53 : vector<8x128xf32>
    %55 = arith.mulf %49, %54 : vector<8x128xf32>
    %cst_29 = arith.constant dense<0.000000e+00> : vector<8x128xf32>
    %56 = tpu.matmul %55, %41, %cst_29 {dimension_numbers = #tpu.dot_dimension_numbers<[1], [0], [0], [1], [0, 0, 1, 1], [], []>} : vector<8x128xf32>, vector<128x128xf32>, vector<8x128xf32> -> vector<8x128xf32>
    %57 = vector.broadcast %42 : vector<1x128xf32> to vector<8x128xf32>
    %58 = arith.addf %56, %57 : vector<8x128xf32>
    %59 = arith.negf %58 : vector<8x128xf32>
    %60 = math.exp %59 : vector<8x128xf32>
    %cst_30 = arith.constant 1.000000e+00 : f32
    %61 = vector.broadcast %cst_30 : f32 to vector<8x128xf32>
    %62 = arith.addf %61, %60 : vector<8x128xf32>
    %63 = arith.divf %61, %62 : vector<8x128xf32>
    %64 = arith.mulf %58, %63 : vector<8x128xf32>
    %cst_31 = arith.constant dense<0.000000e+00> : vector<8x128xf32>
    %65 = tpu.matmul %64, %41, %cst_31 {dimension_numbers = #tpu.dot_dimension_numbers<[1], [0], [0], [1], [0, 0, 1, 1], [], []>} : vector<8x128xf32>, vector<128x128xf32>, vector<8x128xf32> -> vector<8x128xf32>
    %66 = vector.broadcast %42 : vector<1x128xf32> to vector<8x128xf32>
    %67 = arith.addf %65, %66 : vector<8x128xf32>
    %68 = arith.negf %67 : vector<8x128xf32>
    %69 = math.exp %68 : vector<8x128xf32>
    %cst_32 = arith.constant 1.000000e+00 : f32
    %70 = vector.broadcast %cst_32 : f32 to vector<8x128xf32>
    %71 = arith.addf %70, %69 : vector<8x128xf32>
    %72 = arith.divf %70, %71 : vector<8x128xf32>
    %73 = arith.mulf %67, %72 : vector<8x128xf32>
    %cst_33 = arith.constant dense<0.000000e+00> : vector<8x128xf32>
    %74 = tpu.matmul %73, %41, %cst_33 {dimension_numbers = #tpu.dot_dimension_numbers<[1], [0], [0], [1], [0, 0, 1, 1], [], []>} : vector<8x128xf32>, vector<128x128xf32>, vector<8x128xf32> -> vector<8x128xf32>
    %75 = vector.broadcast %42 : vector<1x128xf32> to vector<8x128xf32>
    %76 = arith.addf %74, %75 : vector<8x128xf32>
    %77 = arith.negf %76 : vector<8x128xf32>
    %78 = math.exp %77 : vector<8x128xf32>
    %cst_34 = arith.constant 1.000000e+00 : f32
    %79 = vector.broadcast %cst_34 : f32 to vector<8x128xf32>
    %80 = arith.addf %79, %78 : vector<8x128xf32>
    %81 = arith.divf %79, %80 : vector<8x128xf32>
    %82 = arith.mulf %76, %81 : vector<8x128xf32>
    %cst_35 = arith.constant dense<0.000000e+00> : vector<8x128xf32>
    %83 = tpu.matmul %82, %41, %cst_35 {dimension_numbers = #tpu.dot_dimension_numbers<[1], [0], [0], [1], [0, 0, 1, 1], [], []>} : vector<8x128xf32>, vector<128x128xf32>, vector<8x128xf32> -> vector<8x128xf32>
    %84 = vector.broadcast %42 : vector<1x128xf32> to vector<8x128xf32>
    %85 = arith.addf %83, %84 : vector<8x128xf32>
    %86 = arith.negf %85 : vector<8x128xf32>
    %87 = math.exp %86 : vector<8x128xf32>
    %cst_36 = arith.constant 1.000000e+00 : f32
    %88 = vector.broadcast %cst_36 : f32 to vector<8x128xf32>
    %89 = arith.addf %88, %87 : vector<8x128xf32>
    %90 = arith.divf %88, %89 : vector<8x128xf32>
    %91 = arith.mulf %85, %90 : vector<8x128xf32>
    %c0_37 = arith.constant 0 : index
    %c0_38 = arith.constant 0 : index
    %92 = vector.load %arg12[%c0_37, %c0_38] : memref<128x2xf32, #tpu.memory_space<vmem>>, vector<128x2xf32>
    %cst_39 = arith.constant dense<0.000000e+00> : vector<8x2xf32>
    %93 = tpu.matmul %91, %92, %cst_39 {dimension_numbers = #tpu.dot_dimension_numbers<[1], [0], [0], [1], [0, 0, 1, 1], [], []>} : vector<8x128xf32>, vector<128x2xf32>, vector<8x2xf32> -> vector<8x2xf32>
    %c0_40 = arith.constant 0 : index
    %c0_41 = arith.constant 0 : index
    %94 = vector.load %arg13[%c0_40, %c0_41] : memref<1x2xf32, #tpu.memory_space<vmem>>, vector<1x2xf32>
    %95 = vector.broadcast %94 : vector<1x2xf32> to vector<8x2xf32>
    %96 = arith.addf %93, %95 : vector<8x2xf32>
    %c0_42 = arith.constant 0 : index
    %c0_43 = arith.constant 0 : index
    %97 = vector.load %arg14[%c0_42, %c0_43] : memref<8x2xf32, #tpu.memory_space<vmem>>, vector<8x2xf32>
    tpu.vector_store %arg14[%c0_42, %c0_43], %96 {strides = array<i32>} : memref<8x2xf32, #tpu.memory_space<vmem>>, vector<8x2xf32>,
    return
  }
  func.func @transform_0(%arg0: i32) -> (i32, i32) {
    %c0_i32 = arith.constant 0 : i32
    %c0_i32_0 = arith.constant 0 : i32
    return %arg0, %c0_i32 : i32, i32
  }
  func.func @transform_1(%arg0: i32) -> (i32, i32) {
    %c0_i32 = arith.constant 0 : i32
    %c0_i32_0 = arith.constant 0 : i32
    return %arg0, %c0_i32 : i32, i32
  }
  func.func @transform_2(%arg0: i32) -> (i32, i32) {
    %c0_i32 = arith.constant 0 : i32
    %c0_i32_0 = arith.constant 0 : i32
    %c0_i32_1 = arith.constant 0 : i32
    return %c0_i32, %c0_i32_0 : i32, i32
  }
  func.func @transform_3(%arg0: i32) -> (i32, i32) {
    %c0_i32 = arith.constant 0 : i32
    %c0_i32_0 = arith.constant 0 : i32
    %c0_i32_1 = arith.constant 0 : i32
    return %c0_i32, %c0_i32_0 : i32, i32
  }
  func.func @transform_4(%arg0: i32) -> (i32, i32) {
    %c0_i32 = arith.constant 0 : i32
    %c0_i32_0 = arith.constant 0 : i32
    %c0_i32_1 = arith.constant 0 : i32
    return %c0_i32, %c0_i32_0 : i32, i32
  }
  func.func @transform_5(%arg0: i32) -> (i32, i32) {
    %c0_i32 = arith.constant 0 : i32
    %c0_i32_0 = arith.constant 0 : i32
    %c0_i32_1 = arith.constant 0 : i32
    return %c0_i32, %c0_i32_0 : i32, i32
  }
  func.func @transform_6(%arg0: i32) -> (i32, i32) {
    %c0_i32 = arith.constant 0 : i32
    %c0_i32_0 = arith.constant 0 : i32
    %c0_i32_1 = arith.constant 0 : i32
    return %c0_i32, %c0_i32_0 : i32, i32
  }
  func.func @transform_7(%arg0: i32) -> (i32, i32) {
    %c0_i32 = arith.constant 0 : i32
    %c0_i32_0 = arith.constant 0 : i32
    %c0_i32_1 = arith.constant 0 : i32
    return %c0_i32, %c0_i32_0 : i32, i32
  }
  func.func @transform_8(%arg0: i32) -> (i32, i32) {
    %c0_i32 = arith.constant 0 : i32
    %c0_i32_0 = arith.constant 0 : i32
    %c0_i32_1 = arith.constant 0 : i32
    return %c0_i32, %c0_i32_0 : i32, i32
  }
  func.func @transform_9(%arg0: i32) -> (i32, i32) {
    %c0_i32 = arith.constant 0 : i32
    %c0_i32_0 = arith.constant 0 : i32
    %c0_i32_1 = arith.constant 0 : i32
    return %c0_i32, %c0_i32_0 : i32, i32
  }
  func.func @transform_10(%arg0: i32) -> (i32, i32) {
    %c0_i32 = arith.constant 0 : i32
    %c0_i32_0 = arith.constant 0 : i32
    %c0_i32_1 = arith.constant 0 : i32
    return %c0_i32, %c0_i32_0 : i32, i32
  }
  func.func @transform_11(%arg0: i32) -> (i32, i32) {
    %c0_i32 = arith.constant 0 : i32
    %c0_i32_0 = arith.constant 0 : i32
    %c0_i32_1 = arith.constant 0 : i32
    return %c0_i32, %c0_i32_0 : i32, i32
  }
  func.func @transform_12(%arg0: i32) -> (i32, i32) {
    %c0_i32 = arith.constant 0 : i32
    %c0_i32_0 = arith.constant 0 : i32
    %c0_i32_1 = arith.constant 0 : i32
    return %c0_i32, %c0_i32_0 : i32, i32
  }
  func.func @transform_13(%arg0: i32) -> (i32, i32) {
    %c0_i32 = arith.constant 0 : i32
    %c0_i32_0 = arith.constant 0 : i32
    return %arg0, %c0_i32 : i32, i32
  }
}

</mosaic_0001>

<bundles_post_ra>
// kernel: model_forward.1
= control target key start
LH: loop header
LB: loop body
LE: loop exit
PB: predicated region body
PF: predicated region fallthrough
CT: control target
= control target key end

     0   :  { %v869_v0 = vmov 0   ;;  %v870_v2 = vmov 1   ;;  %v871_v48 = vmov 2102212464   ;;  %v872_v50 = vmov 920167782   ;;  %s1365_s1 = inlined_call_operand.vmem [shape: f32[8,1], index: 1, kind: input, shape index: {}]   ;;  %s1366_s0 = inlined_call_operand.vmem [shape: f32[8,2], index: 0, kind: input, shape index: {}]   ;;  %s1367_s2 = inlined_call_operand.vmem [shape: f32[1,128], index: 2, kind: input, shape index: {}]   ;;  %s1368_s3 = inlined_call_operand.vmem [shape: f32[2,64], index: 3, kind: input, shape index: {}]   ;;  %s1369_s4 = inlined_call_operand.vmem [shape: f32[1,64], index: 4, kind: input, shape index: {}]   ;;  %s1370_s5 = inlined_call_operand.vmem [shape: f32[256,64], index: 5, kind: input, shape index: {}]   ;;  %s1371_s6 = inlined_call_operand.vmem [shape: f32[1,64], index: 6, kind: input, shape index: {}]   ;;  %s1372_s8 = inlined_call_operand.vmem [shape: f32[1,64], index: 8, kind: input, shape index: {}]   ;;  %s1373_s7 = inlined_call_operand.vmem [shape: f32[64,64], index: 7, kind: input, shape index: {}]   ;;  %s1374_s9 = inlined_call_operand.vmem [shape: f32[128,128], index: 9, kind: input, shape index: {}]   ;;  %s1375_s10 = inlined_call_operand.vmem [shape: f32[1,128], index: 10, kind: input, shape index: {}]   ;;  %s1376_s12 = inlined_call_operand.vmem [shape: f32[1,2], index: 12, kind: input, shape index: {}]   ;;  %s1377_s11 = inlined_call_operand.vmem [shape: f32[128,2], index: 11, kind: input, shape index: {}]   ;;  %s1378_s13 = inlined_call_operand.vmem [shape: f32[8,2], index: 13, kind: output, shape index: {}]  }
   0x1   :  { %835 = vset.pattern.permute.xlu0 %v869_v0  ;;  %v45_v1 = vld [vmem:[%s1365_s1] sm:$0xff]  ;;  %836 = vset.pattern.permute.xlu1 %v870_v2  ;;  %v417_v4 = vld [vmem:[%s1370_s5 + $0xf8] sm:$0xff]  ;;  %v416_v6 = vld [vmem:[%s1370_s5 + $0xf0] sm:$0xff]  ;;  %v873_v52 = vmov 683565275  }
   0x2   :  { %v44_v3 = vld [vmem:[%s1366_s0] sm:$0xff]  ;;  %70 = vperm.xlu0 %835, %v45_v1   ;;  %v401_v5 = vld [vmem:[%s1370_s5 + $0x78] sm:$0xff]  ;;  %418 = vmatpush.msra.mxu0 %v417_v4  ;;  %v400_v7 = vld [vmem:[%s1370_s5 + $0x70] sm:$0xff]  ;;  %v874_v55 = vmov 1326507024  }
   0x3   :  { %57 = vperm.xlu1 %836, %v44_v3   ;;  %438 = vmatpush.msra.mxu1 %v401_v5  ;;  %v415_v8 = vld [vmem:[%s1370_s5 + $0xe8] sm:$0xff]  ;;  %v414_v10 = vld [vmem:[%s1370_s5 + $0xe0] sm:$0xff]  ;;  %v413_v12 = vld [vmem:[%s1370_s5 + $0xd8] sm:$0xff]  ;;  %v875_v59 = vmov 2475754826  }
   0x4   :  { %v399_v9 = vld [vmem:[%s1370_s5 + $0x68] sm:$0xff]  ;;  %419 = vmatpush.msra.mxu0 %v416_v6  ;;  %v398_v11 = vld [vmem:[%s1370_s5 + $0x60] sm:$0xff]  ;;  %v397_v13 = vld [vmem:[%s1370_s5 + $0x58] sm:$0xff]  ;;  %v876_v62 = vmov 2131351028  }
   0x5   :  { %439 = vmatpush.msra.mxu1 %v400_v7  ;;  %v837_v14 = vld [vmem:[%s1367_s2] ss:$0 sm:$0xff]  ;;  %v412_v15 = vld [vmem:[%s1370_s5 + $0xd0] sm:$0xff]  ;;  %v411_v17 = vld [vmem:[%s1370_s5 + $0xc8] sm:$0xff] }
   0x6   :  { %420 = vmatpush.msra.mxu0 %v415_v8  ;;  %v396_v16 = vld [vmem:[%s1370_s5 + $0x50] sm:$0xff]  ;;  %v395_v18 = vld [vmem:[%s1370_s5 + $0x48] sm:$0xff]  ;;  %v410_v21 = vld [vmem:[%s1370_s5 + $0xc0] sm:$0xff] }
   0x7   :  { %440 = vmatpush.msra.mxu1 %v399_v9  ;;  %v394_v22 = vld [vmem:[%s1370_s5 + $0x40] sm:$0xff]  ;;  %v409_v24 = vld [vmem:[%s1370_s5 + $0xb8] sm:$0xff]  ;;  %v408_v27 = vld [vmem:[%s1370_s5 + $0xb0] sm:$0xff] }
   0x8   :  { %421 = vmatpush.msra.mxu0 %v414_v10  ;;  %v393_v25 = vld [vmem:[%s1370_s5 + $0x38] sm:$0xff]  ;;  %v392_v28 = vld [vmem:[%s1370_s5 + $0x30] sm:$0xff]  ;;  %v407_v30 = vld [vmem:[%s1370_s5 + $0xa8] sm:$0xff] }
   0x9   :  { %441 = vmatpush.msra.mxu1 %v398_v11  ;;  %v391_v31 = vld [vmem:[%s1370_s5 + $0x28] sm:$0xff]  ;;  %v406_v34 = vld [vmem:[%s1370_s5 + $0xa0] sm:$0xff]  ;;  %v405_v36 = vld [vmem:[%s1370_s5 + $0x98] sm:$0xff] }
   0xa   :  { %50 = vperm.xlu0 %835, %v44_v3   ;;  %422 = vmatpush.msra.mxu0 %v413_v12  ;;  %v390_v35 = vld [vmem:[%s1370_s5 + $0x20] sm:$0xff]  ;;  %v389_v37 = vld [vmem:[%s1370_s5 + $0x18] sm:$0xff]  ;;  %v404_v41 = vld [vmem:[%s1370_s5 + $0x90] sm:$0xff] }
   0xb   :  { %442 = vmatpush.msra.mxu1 %v397_v13  ;;  %v388_v42 = vld [vmem:[%s1370_s5 + $0x10] sm:$0xff]  ;;  %v403_v44 = vld [vmem:[%s1370_s5 + $0x88] sm:$0xff]  ;;  %v402_v57 = vld [vmem:[%s1370_s5 + $0x80] sm:$0xff] }
   0xc   :  { %423 = vmatpush.msra.mxu0 %v412_v15  ;;  %v387_v45 = vld [vmem:[%s1370_s5 + $0x8] sm:$0xff]  ;;  %v386_v58 = vld [vmem:[%s1370_s5] sm:$0xff] }
   0xd   :  { %443 = vmatpush.msra.mxu1 %v396_v16 }
   0xe   :  { %424 = vmatpush.msra.mxu0 %v411_v17 }
   0xf   :  { %444 = vmatpush.msra.mxu1 %v395_v18 }
  0x10   :  { %425 = vmatpush.msra.mxu0 %v410_v21 }
  0x11   :  { %445 = vmatpush.msra.mxu1 %v394_v22 }
  0x12   :  { %426 = vmatpush.msra.mxu0 %v409_v24 }
  0x13   :  { %446 = vmatpush.msra.mxu1 %v393_v25 }
  0x14   :  { %427 = vmatpush.msra.mxu0 %v408_v27 }
  0x15   :  { %447 = vmatpush.msra.mxu1 %v392_v28 }
  0x16   :  { %428 = vmatpush.msra.mxu0 %v407_v30 }
  0x17   :  { %448 = vmatpush.msra.mxu1 %v391_v31 }
  0x18   :  { %429 = vmatpush.msra.mxu0 %v406_v34 }
  0x19   :  { %449 = vmatpush.msra.mxu1 %v390_v35 }
  0x1a   :  { %430 = vmatpush.msra.mxu0 %v405_v36 }
  0x1b   :  { %450 = vmatpush.msra.mxu1 %v389_v37 }
  0x1c   :  { %431 = vmatpush.msra.mxu0 %v404_v41 }
  0x1d   :  { %451 = vmatpush.msra.mxu1 %v388_v42 }
  0x1e   :  { %432 = vmatpush.msra.mxu0 %v403_v44 }
  0x1f   :  { %452 = vmatpush.msra.mxu1 %v387_v45 }
  0x20   :  { %433 = vmatpush.msra.mxu0 %v402_v57 }
  0x21   :  { %453 = vmatpush.msra.mxu1 %v386_v58 }
  0x74   :  { %v71_v19 = vpop.permute.xlu0 %70 }
  0x75   :  { %v999_v20 = vmul.f32 %v837_v14, %v71_v19 }
  0x77   :  { %v80_v23 = vand.u32 2139095040, %v999_v20  ;;  %v77_v32 = vand.u32 2147483647, %v999_v20  ;;  %vm79_vm12 = vcmp.lt.s32.totalorder %v999_v20, 0 }
  0x79   :  { %v81_v26 = vshrl.u32 %v80_v23, 23  ;;  %v84_v38 = vand.u32 8388607, %v77_v32  ;;  %vm78_vm13 = vcmp.le.f32.partialorder %v77_v32, 0.7853982 }
  0x7b   :  { %v812_v29 = vadd.s32 4294967169, %v81_v26  ;;  %v85_v46 = vor.u32 8388608, %v84_v38 }
  0x7d   :  { %v87_v33 = vadd.s32 1, %v812_v29  ;;  %v1069_v6 = vshll.u32 %v85_v46, 8 }
  0x7f   :  { %vm88_vm0 = vcmp.gt.s32.totalorder %v87_v33, 0  ;;  %v126_v16 = vand.u32 65535, %v1069_v6  ;;  %v127_v18 = vshrl.u32 %v1069_v6, 16 }
  0x80   :  { %v89_v39 = vsel %vm88_vm0, %v87_v33, 0 }
  0x81   :  { %v91_v40 = vand.u32 31, %v89_v39  ;;  %v1055_v47 = vshrl.u32 %v89_v39, 5 }
  0x83   :  { %v1047_v43 = vsub.s32 32, %v91_v40  ;;  %v103_v49 = vshll.u32 %v871_v48, %v91_v40  ;;  %v106_v51 = vshll.u32 %v872_v50, %v91_v40  ;;  %v94_v53 = vshll.u32 %v873_v52, %v91_v40 }
  0x84   :  { %v97_v61 = vshll.u32 %v875_v59, %v91_v40  ;;  %v100_v1 = vshll.u32 %v876_v62, %v91_v40  ;;  %vm112_vm1 = vcmp.lt.s32.totalorder %v1055_v47, 4  ;;  %vm109_vm2 = vcmp.lt.s32.totalorder %v1055_v47, 1 }
  0x85   :  { %v104_v54 = vshrl.u32 %v872_v50, %v1047_v43  ;;  %v107_v56 = vshrl.u32 %v874_v55, %v1047_v43  ;;  %v95_v60 = vshrl.u32 %v875_v59, %v1047_v43  ;;  %v98_v63 = vshrl.u32 %v876_v62, %v1047_v43 }
  0x86   :  { %v101_v2 = vshrl.u32 %v871_v48, %v1047_v43  ;;  %vm111_vm3 = vcmp.lt.s32.totalorder %v1055_v47, 3  ;;  %vm110_vm4 = vcmp.lt.s32.totalorder %v1055_v47, 2  ;;  %v93_v44 = vshrl.u32 %v873_v52, %v1047_v43 }
  0x87   :  { %v105_v3 = vor.u32 %v104_v54, %v103_v49  ;;  %v108_v4 = vor.u32 %v107_v56, %v106_v51  ;;  %v96_v5 = vor.u32 %v95_v60, %v94_v53  ;;  %v99_v7 = vor.u32 %v98_v63, %v97_v61 }
  0x88   :  { %v102_v8 = vor.u32 %v101_v2, %v100_v1 }
  0x89   :  { %v118_v9 = vsel %vm112_vm1, %v105_v3, 920167782  ;;  %v122_v10 = vsel %vm112_vm1, %v108_v4, 1326507024  ;;  %v117_v11 = vsel %vm109_vm2, %v96_v5, %v99_v7  ;;  %v113_v51 = vsel %vm109_vm2, %v93_v44, %v96_v5 }
  0x8a   :  { %v119_v12 = vsel %vm111_vm3, %v102_v8, %v118_v9  ;;  %v121_v13 = vsel %vm109_vm2, %v99_v7, %v102_v8  ;;  %v123_v15 = vsel %vm111_vm3, %v105_v3, %v122_v10  ;;  %v114_v40 = vsel %vm112_vm1, %v102_v8, 2102212464 }
  0x8b   :  { %v120_v14 = vsel %vm110_vm4, %v117_v11, %v119_v12  ;;  %v124_v17 = vsel %vm110_vm4, %v121_v13, %v123_v15  ;;  %v115_v53 = vsel %vm111_vm3, %v99_v7, %v114_v40 }
  0x8c   :  { %v150_v19 = vand.u32 65535, %v120_v14  ;;  %v151_v21 = vshrl.u32 %v120_v14, 16  ;;  %v128_v22 = vand.u32 65535, %v124_v17  ;;  %v129_v23 = vshrl.u32 %v124_v17, 16 }
  0x8d   :  { %v116_v52 = vsel %vm110_vm4, %v113_v51, %v115_v53  ;;  %vm220_vm4 = vweird.f32 %v999_v20 }
  0x8e   :  { %v153_v24 = vmul.u32 %v151_v21, %v126_v16  ;;  %v154_v25 = vmul.u32 %v150_v19, %v127_v18  ;;  %v131_v26 = vmul.u32 %v129_v23, %v126_v16  ;;  %v132_v27 = vmul.u32 %v128_v22, %v127_v18 }
  0x8f   :  { %v152_v28 = vmul.u32 %v150_v19, %v126_v16  ;;  %v130_v30 = vmul.u32 %v128_v22, %v126_v16  ;;  %v155_v33 = vmul.u32 %v151_v21, %v127_v18  ;;  %v133_v34 = vmul.u32 %v129_v23, %v127_v18 }
  0x90   :  { %v156_v29 = vshll.u32 %v153_v24, 16  ;;  %v134_v31 = vshll.u32 %v131_v26, 16  ;;  %v158_v35 = vshll.u32 %v154_v25, 16  ;;  %v136_v37 = vshll.u32 %v132_v27, 16 }
  0x91   :  { %v157_v49 = vshrl.u32 %v153_v24, 16  ;;  %v135_v54 = vshrl.u32 %v131_v26, 16  ;;  %v159_v56 = vshrl.u32 %v154_v25, 16  ;;  %v137_v58 = vshrl.u32 %v132_v27, 16 }
  0x92   :  { %vm160_vm5 = vc.u32 %v152_v28, %v156_v29  ;;  %v162_v36 = vadd.s32 %v156_v29, %v152_v28  ;;  %vm138_vm6 = vc.u32 %v130_v30, %v134_v31  ;;  %v140_v38 = vadd.s32 %v134_v31, %v130_v30 }
  0x93   :  { %v161_v39 = vsel %vm160_vm5, 1, %v869_v0  ;;  %v139_v41 = vsel %vm138_vm6, 1, %v869_v0  ;;  %v170_v62 = vmul.u32 %v1069_v6, %v116_v52  ;;  %v489_v52 = vld [vmem:[%s1373_s7 + $0x30] sm:$0xff] }
  0x94   :  { %v163_v42 = vadd.s32 %v161_v39, %v155_v33  ;;  %vm164_vm7 = vc.u32 %v162_v36, %v158_v35  ;;  %v141_v45 = vadd.s32 %v139_v41, %v133_v34  ;;  %vm142_vm8 = vc.u32 %v140_v38, %v136_v37 }
  0x95   :  { %v165_v46 = vsel %vm164_vm7, 1, %v869_v0  ;;  %v143_v48 = vsel %vm142_vm8, 1, %v869_v0  ;;  %v166_v0 = vadd.s32 %v162_v36, %v158_v35 }
  0x96   :  { %v167_v50 = vadd.s32 %v165_v46, %v163_v42  ;;  %v145_v55 = vadd.s32 %v143_v48, %v141_v45 }
  0x98   :  { %v168_v57 = vadd.s32 %v167_v50, %v157_v49  ;;  %v146_v43 = vadd.s32 %v145_v55, %v135_v54 }
  0x9a   :  { %v169_v59 = vadd.s32 %v168_v57, %v159_v56  ;;  %v147_v60 = vadd.s32 %v146_v43, %v137_v58  ;;  %v490_v43 = vld [vmem:[%s1373_s7 + $0x38] sm:$0xff] }
  0x9b   :  { %507 = vmatpush.msra.mxu2 %v490_v43 }
  0x9c   :  { %v173_v61 = vadd.s32 1, %v169_v59  ;;  %vm172_vm9 = vc.u32 %v147_v60, %v166_v0  ;;  %v171_v11 = vadd.s32 %v166_v0, %v147_v60  ;;  %v486_v60 = vld [vmem:[%s1373_s7 + $0x18] sm:$0xff]  ;;  %v485_v0 = vld [vmem:[%s1373_s7 + $0x10] sm:$0xff] }
  0x9d   :  { %508 = vmatpush.msra.mxu2 %v489_v52 }
  0x9e   :  { %v174_v63 = vsel %vm172_vm9, %v173_v61, %v169_v59  ;;  %v488_v59 = vld [vmem:[%s1373_s7 + $0x28] sm:$0xff]  ;;  %vm495_vm9 = vcmask 523264  }
  0x9f   :  { %v175_v1 = vadd.s32 %v174_v63, %v170_v62  ;;  %509 = vmatpush.msra.mxu2 %v488_v59  ;;  %v484_v61 = vld [vmem:[%s1373_s7 + $0x8] sm:$0xff]  ;;  %v483_v62 = vld [vmem:[%s1373_s7] sm:$0xff]  ;;  %v1140_v63 = vld [vmem:[%s1374_s9 + $0x38] sm:$0xff] }
  0xa1   :  { %v176_v2 = vadd.s32 536870912, %v175_v1 }
  0xa3   :  { %v177_v3 = vshrl.u32 %v176_v2, 30  ;;  %v841_v2 = vld [vmem:[%s1371_s6] ss:$0 sm:$0xff] }
  0xa5   :  { %v178_v4 = vshll.u32 %v177_v3, 30  ;;  %v201_v25 = vsub.s32 4, %v177_v3 }
  0xa7   :  { %v179_v5 = vsub.s32 %v175_v1, %v178_v4  ;;  %v202_v30 = vsel %vm79_vm12, %v201_v25, %v177_v3  ;;  %v1145_v1 = vld [vmem:[%s1374_s9 + $0x30] sm:$0xff] }
  0xa8   :  { %v204_v34 = vsel %vm78_vm13, 0, %v202_v30 }
  0xa9   :  { %vm180_vm10 = vcmp.lt.s32.totalorder %v179_v5, 0  ;;  %v181_v7 = vsub.s32 0, %v179_v5  ;;  %v375_v39 = vadd.s32 3, %v204_v34  ;;  %v221_v44 = vand.u32 3, %v204_v34 }
  0xab   :  { %v182_v8 = vsel %vm180_vm10, %v181_v7, %v179_v5  ;;  %v376_v45 = vand.u32 3, %v375_v39  ;;  %vm222_vm14 = vcmp.lt.s32.totalorder %v221_v44, 2  ;;  %vm223_vm15 = vcmp.eq.s32.totalorder %v221_v44, 0 }
  0xac   :  { %v183_v9 = vclz %v182_v8  ;;  %vm226_vm3 = vcmp.eq.s32.totalorder %v221_v44, 2  ;;  %v1160_v8 = vld [vmem:[%s1374_s9 + $0x20] sm:$0xff] }
  0xad   :  { %vm377_vm0 = vcmp.lt.s32.totalorder %v376_v45, 2  ;;  %vm378_vm1 = vcmp.eq.s32.totalorder %v376_v45, 0  ;;  %vm381_vm2 = vcmp.eq.s32.totalorder %v376_v45, 2  ;;  %v527_v44 = vld [vmem:[%s1374_s9 + $0x40] sm:$0xff] }
  0xae   :  { %v813_v10 = vadd.s32 4294967294, %v183_v9  ;;  %v842_v45 = vld [vmem:[%s1372_s8] ss:$0 sm:$0xff] }
  0xb0   :  { %vm814_vm11 = vcmp.lt.s32.totalorder %v813_v10, 0 }
  0xb1   :  { %v186_v47 = vsel %vm814_vm11, 0, %v813_v10  ;;  %v1166_v10 = vld [vmem:[%s1374_s9 + $0x18] sm:$0xff] }
  0xb2   :  { %v187_v12 = vsub.s32 32, %v186_v47  ;;  %v191_v13 = vsub.s32 4294967266, %v186_v47  ;;  %v188_v14 = vshll.u32 %v179_v5, %v186_v47  ;;  %v1154_v5 = vld [vmem:[%s1374_s9 + $0x28] sm:$0xff] }
  0xb4   :  { %v189_v15 = vshrl.u32 %v171_v11, %v187_v12  ;;  %v192_v6 = vadd.s32 127, %v191_v13  ;;  %v1172_v11 = vld [vmem:[%s1374_s9 + $0x10] sm:$0xff]  ;;  %v1178_v12 = vld [vmem:[%s1374_s9 + $0x8] sm:$0xff]  ;;  %v1184_v13 = vld [vmem:[%s1374_s9] sm:$0xff] }
  0xb6   :  { %v190_v16 = vor.u32 %v189_v15, %v188_v14  ;;  %v193_v17 = vshll.u32 %v192_v6, 23  ;;  %v1190_v14 = vld [vmem:[%s1374_s9 + $0x78] sm:$0xff]  ;;  %v1195_v15 = vld [vmem:[%s1374_s9 + $0x70] sm:$0xff] }
  0xb7   :  { %547 = vmatpush.msra.mxu3 %v1190_v14  ;;  %646 = vmatpush.msrb.mxu0 %v1190_v14 }
  0xb8   :  { %v194_v18 = vor.u32 4788187, %v193_v17  ;;  %v197_v21 = vcvt.s32.f32 %v190_v16  ;;  %v1203_v16 = vld [vmem:[%s1374_s9 + $0x68] sm:$0xff]  ;;  %686 = vmatpush.msrb.mxu1 %v1190_v14 }
  0xb9   :  { %548 = vmatpush.msra.mxu3 %v1195_v15  ;;  %647 = vmatpush.msrb.mxu0 %v1195_v15 }
  0xba   :  { %v195_v19 = vand.u32 2147483647, %v194_v18  ;;  %v1211_v18 = vld [vmem:[%s1374_s9 + $0x60] sm:$0xff]  ;;  %687 = vmatpush.msrb.mxu1 %v1195_v15 }
  0xbb   :  { %549 = vmatpush.msra.mxu3 %v1203_v16  ;;  %648 = vmatpush.msrb.mxu0 %v1203_v16 }
  0xbc   :  { %v198_v22 = vmul.f32 %v197_v21, %v195_v19  ;;  %v1219_v19 = vld [vmem:[%s1374_s9 + $0x58] sm:$0xff]  ;;  %688 = vmatpush.msrb.mxu1 %v1203_v16  ;;  %v1227_v21 = vld [vmem:[%s1374_s9 + $0x50] sm:$0xff] }
  0xbd   :  { %550 = vmatpush.msra.mxu3 %v1211_v18  ;;  %649 = vmatpush.msrb.mxu0 %v1211_v18 }
  0xbe   :  { %v199_v23 = vxor.u32 2147483648, %v198_v22  ;;  %689 = vmatpush.msrb.mxu1 %v1211_v18 }
  0xbf   :  { %551 = vmatpush.msra.mxu3 %v1219_v19  ;;  %650 = vmatpush.msrb.mxu0 %v1219_v19 }
  0xc0   :  { %v200_v24 = vsel %vm79_vm12, %v199_v23, %v198_v22  ;;  %690 = vmatpush.msrb.mxu1 %v1219_v19 }
  0xc1   :  { %v203_v26 = vsel %vm78_vm13, %v999_v20, %v200_v24  ;;  %v487_v20 = vld [vmem:[%s1373_s7 + $0x20] sm:$0xff]  ;;  %552 = vmatpush.msra.mxu3 %v1227_v21  ;;  %651 = vmatpush.msrb.mxu0 %v1227_v21 }
  0xc2   :  { %v205_v27 = vmul.f32 %v203_v26, %v203_v26  ;;  %510 = vmatpush.msra.mxu2 %v487_v20  ;;  %691 = vmatpush.msrb.mxu1 %v1227_v21 }
  0xc4   :  { %v206_v28 = vmul.f32 -0.001358992, %v205_v27  ;;  %v213_v29 = vmul.f32 -0.00019511016, %v205_v27  ;;  %511 = vmatpush.msra.mxu2 %v486_v60 }
  0xc6   :  { %v207_v31 = vadd.f32 0.041655596, %v206_v28  ;;  %v214_v33 = vadd.f32 0.008332121, %v213_v29  ;;  %512 = vmatpush.msra.mxu2 %v485_v0  ;;  %v838_v28 = vld [vmem:[%s1368_s3 + $0x1] ss:$0 sm:$0xff] }
  0xc7   :  { %v839_v29 = vld [vmem:[%s1368_s3] ss:$0 sm:$0xff] }
  0xc8   :  { %v208_v35 = vmul.f32 %v207_v31, %v205_v27  ;;  %v215_v36 = vmul.f32 %v214_v33, %v205_v27  ;;  %513 = vmatpush.msra.mxu2 %v484_v61  ;;  %v58_v31 = vpop.permute.xlu1 %57  ;;  %v51_v33 = vpop.permute.xlu0 %50 }
  0xca   :  { %v209_v37 = vadd.f32 -0.4999988, %v208_v35  ;;  %v216_v38 = vadd.f32 -0.16666654, %v215_v36  ;;  %514 = vmatpush.msra.mxu2 %v483_v62 }
  0xcc   :  { %v210_v40 = vmul.f32 %v209_v37, %v205_v27  ;;  %v217_v41 = vmul.f32 %v216_v38, %v205_v27  ;;  %570 = vmatpush.msrb.mxu2 %v1140_v63  ;;  %v61_v37 = vmul.f32 %v838_v28, %v58_v31  ;;  %v54_v38 = vmul.f32 %v839_v29, %v51_v33 }
  0xce   :  { %v211_v42 = vadd.f32 1.0, %v210_v40  ;;  %v218_v32 = vadd.f32 1.0, %v217_v41  ;;  %571 = vmatpush.msrb.mxu2 %v1145_v1  ;;  %v840_v40 = vld [vmem:[%s1369_s4] ss:$0 sm:$0xff]  ;;  %v62_v41 = vadd.f32 %v61_v37, %v54_v38 }
  0xd0   :  { %v219_v46 = vmul.f32 %v218_v32, %v203_v26  ;;  %v227_v48 = vxor.u32 2147483648, %v211_v42  ;;  %572 = vmatpush.msrb.mxu2 %v1154_v5  ;;  %v528_v32 = vld [vmem:[%s1374_s9 + $0x48] sm:$0xff] }
  0xd1   :  { %553 = vmatpush.msra.mxu3 %v528_v32  ;;  %652 = vmatpush.msrb.mxu0 %v528_v32 }
  0xd2   :  { %v224_v49 = vxor.u32 2147483648, %v219_v46  ;;  %v383_v51 = vsel %vm381_vm2, %v227_v48, %v219_v46  ;;  %v228_v54 = vsel %vm226_vm3, %v227_v48, %v219_v46  ;;  %573 = vmatpush.msrb.mxu2 %v1160_v8  ;;  %692 = vmatpush.msrb.mxu1 %v528_v32 }
  0xd3   :  { %554 = vmatpush.msra.mxu3 %v527_v44  ;;  %653 = vmatpush.msrb.mxu0 %v527_v44 }
  0xd4   :  { %v380_v50 = vsel %vm378_vm1, %v211_v42, %v224_v49  ;;  %v225_v53 = vsel %vm223_vm15, %v211_v42, %v224_v49  ;;  %574 = vmatpush.msrb.mxu2 %v1166_v10  ;;  %v67_v42 = vadd.f32 %v840_v40, %v62_v41  ;;  %693 = vmatpush.msrb.mxu1 %v527_v44  ;;  %v1304_v49 = vld [vmem:[%s1375_s10] ss:$0 sm:$0xff] }
  0xd5   :  { %v384_v55 = vsel %vm377_vm0, %v380_v50, %v383_v51  ;;  %v229_v56 = vsel %vm222_vm14, %v225_v53, %v228_v54  ;;  %606 = vmatpush.msrb.mxu3 %v1190_v14  ;;  %654 = vmatpush.msrb.mxu0 %v1140_v63 }
  0xd6   :  { %v385_v57 = vsel %vm220_vm4, nan, %v384_v55  ;;  %v230_v58 = vsel %vm220_vm4, nan, %v229_v56  ;;  %575 = vmatpush.msrb.mxu2 %v1172_v11  ;;  %694 = vmatpush.msrb.mxu1 %v1140_v63 }
  0xd7   :  { %434 = vmatmul.f32.vlgmr.msra.gmra.mxu0 %v385_v57  ;;  %454 = vmatmul.f32.vlgmr.msra.gmra.mxu1 %v230_v58 }
  0xd8   :  { %576 = vmatpush.msrb.mxu2 %v1178_v12  ;;  %607 = vmatpush.msrb.mxu3 %v1195_v15 }
  0xd9   :  { %655 = vmatpush.msrb.mxu0 %v1145_v1  ;;  %695 = vmatpush.msrb.mxu1 %v1145_v1 }
  0xda   :  { %577 = vmatpush.msrb.mxu2 %v1184_v13  ;;  %608 = vmatpush.msrb.mxu3 %v1203_v16 }
  0xdb   :  { %656 = vmatpush.msrb.mxu0 %v1154_v5  ;;  %696 = vmatpush.msrb.mxu1 %v1154_v5 }
  0xdc   :  { %609 = vmatpush.msrb.mxu3 %v1211_v18 }
  0xdd   :  { %657 = vmatpush.msrb.mxu0 %v1160_v8  ;;  %697 = vmatpush.msrb.mxu1 %v1160_v8 }
  0xde   :  { %610 = vmatpush.msrb.mxu3 %v1219_v19 }
  0xdf   :  { %658 = vmatpush.msrb.mxu0 %v1166_v10  ;;  %698 = vmatpush.msrb.mxu1 %v1166_v10 }
  0xe0   :  { %611 = vmatpush.msrb.mxu3 %v1227_v21 }
  0xe1   :  { %659 = vmatpush.msrb.mxu0 %v1172_v11  ;;  %699 = vmatpush.msrb.mxu1 %v1172_v11 }
  0xe2   :  { %612 = vmatpush.msrb.mxu3 %v528_v32 }
  0xe3   :  { %660 = vmatpush.msrb.mxu0 %v1178_v12  ;;  %700 = vmatpush.msrb.mxu1 %v1178_v12 }
  0xe4   :  { %613 = vmatpush.msrb.mxu3 %v527_v44 }
  0xe5   :  { %661 = vmatpush.msrb.mxu0 %v1184_v13  ;;  %701 = vmatpush.msrb.mxu1 %v1184_v13 }
  0xe6   :  { %614 = vmatpush.msrb.mxu3 %v1140_v63 }
  0xe8   :  { %615 = vmatpush.msrb.mxu3 %v1145_v1 }
  0xea   :  { %616 = vmatpush.msrb.mxu3 %v1154_v5 }
  0xec   :  { %617 = vmatpush.msrb.mxu3 %v1160_v8 }
  0xee   :  { %618 = vmatpush.msrb.mxu3 %v1166_v10 }
  0xf0   :  { %619 = vmatpush.msrb.mxu3 %v1172_v11 }
  0xf2   :  { %620 = vmatpush.msrb.mxu3 %v1178_v12 }
  0xf4   :  { %621 = vmatpush.msrb.mxu3 %v1184_v13 }
 0x154   :  { %v435_v3 = vpop.f32.mrf.mxu0  ;;  %v455_v4 = vpop.f32.mrf.mxu1 }
 0x155   :  { %v456_v7 = vadd.f32 %v455_v4, %v435_v3 }
 0x157   :  { %v462_v9 = vadd.f32 %v841_v2, %v456_v7 }
 0x159   :  { %v818_v47 = vmul.f32 -1.442695, %v462_v9 }
 0x15b   :  { %845 = vpow2.f32 %v818_v47 }
 0x161   :  { %v846_v6 = vpop.eup %845 }
 0x162   :  { %v466_v17 = vadd.f32 1.0, %v846_v6 }
 0x164   :  { %847 = vrcp.f32 %v466_v17  ;;  %v478_v25 = vand.u32 2147483648, %v466_v17  ;;  %v476_v27 = vand.u32 2147483647, %v466_v17  ;;  %vm472_vm6 = vweird.f32 %v466_v17 }
 0x166   :  { %v479_v34 = vor.u32 1.1754944e-38, %v478_v25  ;;  %vm477_vm8 = vcmp.eq.f32.partialorder %v476_v27, 8.507059e+37 }
 0x16a   :  { %v848_v22 = vpop.eup %847 }
 0x16b   :  { %v468_v23 = vmul.f32 %v848_v22, %v466_v17  ;;  %vm473_vm5 = vweird.f32 %v848_v22 }
 0x16c   :  { %vm474_vm7 = vmor %vm472_vm6, %vm473_vm5 }
 0x16d   :  { %v469_v24 = vsub.f32 1.0, %v468_v23 }
 0x16f   :  { %v470_v26 = vmul.f32 %v848_v22, %v469_v24 }
 0x171   :  { %v471_v30 = vadd.f32 %v848_v22, %v470_v26 }
 0x173   :  { %v475_v35 = vsel %vm474_vm7, %v848_v22, %v471_v30 }
 0x174   :  { %v480_v36 = vsel %vm477_vm8, %v479_v34, %v475_v35 }
 0x175   :  { %v482_v39 = vmul.f32 %v480_v36, %v462_v9 }
 0x177   :  { %819 = vmatmul.msk.f32.vlgmr.msra.gmra.mxu2 %vm495_vm9, %v482_v39 }
 0x178   :  { %726 = vmatpush.msra.mxu2 %v1190_v14 }
 0x17a   :  { %727 = vmatpush.msra.mxu2 %v1195_v15 }
 0x17c   :  { %728 = vmatpush.msra.mxu2 %v1203_v16 }
 0x17e   :  { %729 = vmatpush.msra.mxu2 %v1211_v18 }
 0x17f   :  { %821 = vmatmul.msk.f32.vlgmr.msrb.gmra.mxu2 %vm495_vm9, %v67_v42 }
 0x180   :  { %730 = vmatpush.msra.mxu2 %v1219_v19 }
 0x182   :  { %731 = vmatpush.msra.mxu2 %v1227_v21 }
 0x184   :  { %732 = vmatpush.msra.mxu2 %v528_v32 }
 0x186   :  { %733 = vmatpush.msra.mxu2 %v527_v44 }
 0x188   :  { %734 = vmatpush.msra.mxu2 %v1140_v63 }
 0x18a   :  { %735 = vmatpush.msra.mxu2 %v1145_v1 }
 0x18c   :  { %736 = vmatpush.msra.mxu2 %v1154_v5 }
 0x18e   :  { %737 = vmatpush.msra.mxu2 %v1160_v8 }
 0x190   :  { %738 = vmatpush.msra.mxu2 %v1166_v10 }
 0x192   :  { %739 = vmatpush.msra.mxu2 %v1172_v11 }
 0x194   :  { %740 = vmatpush.msra.mxu2 %v1178_v12 }
 0x196   :  { %741 = vmatpush.msra.mxu2 %v1184_v13 }
 0x1fa   :  { %v516_v46 = vpop.f32.mrf.mxu2 }
 0x1fb   :  { %v517_v48 = vadd.f32 %v842_v45, %v516_v46 }
 0x1fd   :  { %820 = vmatmul.msk.f32.vlgmr.msra.gmra.mxu3 %vm495_vm9, %v517_v48 }
 0x202   :  { %v579_v50 = vpop.f32.mrf.mxu2 }
 0x280   :  { %v556_v51 = vpop.f32.mrf.mxu3 }
 0x281   :  { %v580_v53 = vadd.f32 %v579_v50, %v556_v51 }
 0x283   :  { %v585_v54 = vadd.f32 %v1304_v49, %v580_v53 }
 0x285   :  { %v822_v55 = vmul.f32 -1.442695, %v585_v54 }
 0x287   :  { %849 = vpow2.f32 %v822_v55  ;;  %v780_v55 = vld [vmem:[%s1377_s11 + $0x70] sm:$0xff] }
 0x28d   :  { %v850_v56 = vpop.eup %849 }
 0x28e   :  { %v589_v57 = vadd.f32 1.0, %v850_v56  ;;  %v779_v56 = vld [vmem:[%s1377_s11 + $0x68] sm:$0xff] }
 0x290   :  { %851 = vrcp.f32 %v589_v57  ;;  %v601_v59 = vand.u32 2147483648, %v589_v57  ;;  %v599_v60 = vand.u32 2147483647, %v589_v57  ;;  %vm595_vm11 = vweird.f32 %v589_v57 }
 0x292   :  { %v602_v61 = vor.u32 1.1754944e-38, %v601_v59  ;;  %vm600_vm13 = vcmp.eq.f32.partialorder %v599_v60, 8.507059e+37  ;;  %v774_v59 = vld [vmem:[%s1377_s11 + $0x40] sm:$0xff]  ;;  %v772_v60 = vld [vmem:[%s1377_s11 + $0x30] sm:$0xff] }
 0x296   :  { %v852_v58 = vpop.eup %851 }
 0x297   :  { %v591_v43 = vmul.f32 %v852_v58, %v589_v57  ;;  %vm596_vm10 = vweird.f32 %v852_v58  ;;  %v778_v57 = vld [vmem:[%s1377_s11 + $0x60] sm:$0xff] }
 0x298   :  { %vm597_vm12 = vmor %vm595_vm11, %vm596_vm10 }
 0x299   :  { %v592_v52 = vsub.f32 1.0, %v591_v43  ;;  %v776_v43 = vld [vmem:[%s1377_s11 + $0x50] sm:$0xff] }
 0x29b   :  { %v593_v20 = vmul.f32 %v852_v58, %v592_v52  ;;  %v775_v52 = vld [vmem:[%s1377_s11 + $0x48] sm:$0xff] }
 0x29d   :  { %v594_v0 = vadd.f32 %v852_v58, %v593_v20  ;;  %v773_v20 = vld [vmem:[%s1377_s11 + $0x38] sm:$0xff] }
 0x29f   :  { %v598_v62 = vsel %vm597_vm12, %v852_v58, %v594_v0  ;;  %v777_v58 = vld [vmem:[%s1377_s11 + $0x58] sm:$0xff]  ;;  %v771_v0 = vld [vmem:[%s1377_s11 + $0x28] sm:$0xff] }
 0x2a0   :  { %v603_v63 = vsel %vm600_vm13, %v602_v61, %v598_v62  ;;  %v770_v61 = vld [vmem:[%s1377_s11 + $0x20] sm:$0xff]  ;;  %v769_v62 = vld [vmem:[%s1377_s11 + $0x18] sm:$0xff] }
 0x2a1   :  { %v605_v1 = vmul.f32 %v603_v63, %v585_v54  ;;  %v781_v54 = vld [vmem:[%s1377_s11 + $0x78] sm:$0xff]  ;;  %v768_v63 = vld [vmem:[%s1377_s11 + $0x10] sm:$0xff] }
 0x2a2   :  { %786 = vmatpush.msra.mxu3 %v781_v54 }
 0x2a3   :  { %622 = vmatmul.f32.vlgmr.msrb.gmra.mxu3 %v605_v1  ;;  %v767_v1 = vld [vmem:[%s1377_s11 + $0x8] sm:$0xff] }
 0x2a4   :  { %787 = vmatpush.msra.mxu3 %v780_v55 }
 0x2a6   :  { %788 = vmatpush.msra.mxu3 %v779_v56 }
 0x2a8   :  { %789 = vmatpush.msra.mxu3 %v778_v57 }
 0x2aa   :  { %790 = vmatpush.msra.mxu3 %v777_v58 }
 0x2ac   :  { %791 = vmatpush.msra.mxu3 %v776_v43 }
 0x2ae   :  { %792 = vmatpush.msra.mxu3 %v775_v52 }
 0x2b0   :  { %793 = vmatpush.msra.mxu3 %v774_v59 }
 0x2b2   :  { %794 = vmatpush.msra.mxu3 %v773_v20 }
 0x2b4   :  { %795 = vmatpush.msra.mxu3 %v772_v60 }
 0x2b6   :  { %796 = vmatpush.msra.mxu3 %v771_v0 }
 0x2b8   :  { %797 = vmatpush.msra.mxu3 %v770_v61 }
 0x2ba   :  { %798 = vmatpush.msra.mxu3 %v769_v62 }
 0x2bc   :  { %799 = vmatpush.msra.mxu3 %v768_v63 }
 0x2be   :  { %800 = vmatpush.msra.mxu3 %v767_v1 }
 0x326   :  { %v623_v2 = vpop.f32.mrf.mxu3 }
 0x327   :  { %v624_v3 = vadd.f32 %v1304_v49, %v623_v2 }
 0x329   :  { %v823_v4 = vmul.f32 -1.442695, %v624_v3 }
 0x32b   :  { %853 = vpow2.f32 %v823_v4 }
 0x331   :  { %v854_v5 = vpop.eup %853 }
 0x332   :  { %v629_v7 = vadd.f32 1.0, %v854_v5 }
 0x334   :  { %855 = vrcp.f32 %v629_v7  ;;  %v641_v47 = vand.u32 2147483648, %v629_v7  ;;  %v639_v12 = vand.u32 2147483647, %v629_v7  ;;  %vm635_vm15 = vweird.f32 %v629_v7 }
 0x336   :  { %v642_v14 = vor.u32 1.1754944e-38, %v641_v47  ;;  %vm640_vm1 = vcmp.eq.f32.partialorder %v639_v12, 8.507059e+37 }
 0x33a   :  { %v856_v8 = vpop.eup %855 }
 0x33b   :  { %v631_v9 = vmul.f32 %v856_v8, %v629_v7  ;;  %vm636_vm14 = vweird.f32 %v856_v8 }
 0x33c   :  { %vm637_vm0 = vmor %vm635_vm15, %vm636_vm14  ;;  %vm806_vm14 = vcmask 15360  }
 0x33d   :  { %v632_v10 = vsub.f32 1.0, %v631_v9 }
 0x33f   :  { %v633_v11 = vmul.f32 %v856_v8, %v632_v10 }
 0x341   :  { %v634_v13 = vadd.f32 %v856_v8, %v633_v11 }
 0x343   :  { %v638_v15 = vsel %vm637_vm0, %v856_v8, %v634_v13 }
 0x344   :  { %v643_v6 = vsel %vm640_vm1, %v642_v14, %v638_v15 }
 0x345   :  { %v645_v16 = vmul.f32 %v643_v6, %v624_v3  ;;  %v766_v3 = vld [vmem:[%s1377_s11] sm:$0xff] }
 0x346   :  { %801 = vmatpush.msra.mxu3 %v766_v3 }
 0x347   :  { %662 = vmatmul.f32.vlgmr.msrb.gmra.mxu0 %v645_v16 }
 0x3c4   :  { %v663_v17 = vpop.f32.mrf.mxu0 }
 0x3c5   :  { %v664_v18 = vadd.f32 %v1304_v49, %v663_v17  ;;  %v844_v17 = vld [vmem:[%s1376_s12] ss:$0 sm:$0xff] }
 0x3c7   :  { %v824_v19 = vmul.f32 -1.442695, %v664_v18 }
 0x3c9   :  { %857 = vpow2.f32 %v824_v19 }
 0x3cf   :  { %v858_v21 = vpop.eup %857 }
 0x3d0   :  { %v669_v22 = vadd.f32 1.0, %v858_v21 }
 0x3d2   :  { %859 = vrcp.f32 %v669_v22  ;;  %v681_v26 = vand.u32 2147483648, %v669_v22  ;;  %v679_v28 = vand.u32 2147483647, %v669_v22  ;;  %vm675_vm3 = vweird.f32 %v669_v22 }
 0x3d4   :  { %v682_v30 = vor.u32 1.1754944e-38, %v681_v26  ;;  %vm680_vm5 = vcmp.eq.f32.partialorder %v679_v28, 8.507059e+37 }
 0x3d8   :  { %v860_v23 = vpop.eup %859 }
 0x3d9   :  { %v671_v24 = vmul.f32 %v860_v23, %v669_v22  ;;  %vm676_vm2 = vweird.f32 %v860_v23 }
 0x3da   :  { %vm677_vm4 = vmor %vm675_vm3, %vm676_vm2 }
 0x3db   :  { %v672_v25 = vsub.f32 1.0, %v671_v24 }
 0x3dd   :  { %v673_v27 = vmul.f32 %v860_v23, %v672_v25 }
 0x3df   :  { %v674_v29 = vadd.f32 %v860_v23, %v673_v27 }
 0x3e1   :  { %v678_v31 = vsel %vm677_vm4, %v860_v23, %v674_v29 }
 0x3e2   :  { %v683_v33 = vsel %vm680_vm5, %v682_v30, %v678_v31 }
 0x3e3   :  { %v685_v34 = vmul.f32 %v683_v33, %v664_v18 }
 0x3e5   :  { %702 = vmatmul.f32.vlgmr.msrb.gmra.mxu1 %v685_v34 }
 0x462   :  { %v703_v35 = vpop.f32.mrf.mxu1 }
 0x463   :  { %v704_v36 = vadd.f32 %v1304_v49, %v703_v35 }
 0x465   :  { %v825_v37 = vmul.f32 -1.442695, %v704_v36 }
 0x467   :  { %861 = vpow2.f32 %v825_v37 }
 0x46d   :  { %v862_v38 = vpop.eup %861 }
 0x46e   :  { %v709_v39 = vadd.f32 1.0, %v862_v38 }
 0x470   :  { %863 = vrcp.f32 %v709_v39  ;;  %v721_v32 = vand.u32 2147483648, %v709_v39  ;;  %v719_v45 = vand.u32 2147483647, %v709_v39  ;;  %vm715_vm7 = vweird.f32 %v709_v39 }
 0x472   :  { %v722_v48 = vor.u32 1.1754944e-38, %v721_v32  ;;  %vm720_vm9 = vcmp.eq.f32.partialorder %v719_v45, 8.507059e+37 }
 0x476   :  { %v864_v40 = vpop.eup %863 }
 0x477   :  { %v711_v41 = vmul.f32 %v864_v40, %v709_v39  ;;  %vm716_vm6 = vweird.f32 %v864_v40 }
 0x478   :  { %vm717_vm8 = vmor %vm715_vm7, %vm716_vm6 }
 0x479   :  { %v712_v42 = vsub.f32 1.0, %v711_v41 }
 0x47b   :  { %v713_v44 = vmul.f32 %v864_v40, %v712_v42 }
 0x47d   :  { %v714_v46 = vadd.f32 %v864_v40, %v713_v44 }
 0x47f   :  { %v718_v50 = vsel %vm717_vm8, %v864_v40, %v714_v46 }
 0x480   :  { %v723_v51 = vsel %vm720_vm9, %v722_v48, %v718_v50 }
 0x481   :  { %v725_v53 = vmul.f32 %v723_v51, %v704_v36 }
 0x483   :  { %742 = vmatmul.f32.vlgmr.msra.gmra.mxu2 %v725_v53 }
 0x506   :  { %v743_v2 = vpop.f32.mrf.mxu2 }
 0x507   :  { %v744_v4 = vadd.f32 %v1304_v49, %v743_v2 }
 0x509   :  { %v826_v5 = vmul.f32 -1.442695, %v744_v4 }
 0x50b   :  { %865 = vpow2.f32 %v826_v5 }
 0x511   :  { %v866_v7 = vpop.eup %865 }
 0x512   :  { %v749_v8 = vadd.f32 1.0, %v866_v7 }
 0x514   :  { %867 = vrcp.f32 %v749_v8  ;;  %v761_v11 = vand.u32 2147483648, %v749_v8  ;;  %v759_v13 = vand.u32 2147483647, %v749_v8  ;;  %vm755_vm11 = vweird.f32 %v749_v8 }
 0x516   :  { %v762_v15 = vor.u32 1.1754944e-38, %v761_v11  ;;  %vm760_vm13 = vcmp.eq.f32.partialorder %v759_v13, 8.507059e+37 }
 0x51a   :  { %v868_v9 = vpop.eup %867 }
 0x51b   :  { %v751_v10 = vmul.f32 %v868_v9, %v749_v8  ;;  %vm756_vm10 = vweird.f32 %v868_v9 }
 0x51c   :  { %vm757_vm12 = vmor %vm755_vm11, %vm756_vm10 }
 0x51d   :  { %v752_v47 = vsub.f32 1.0, %v751_v10 }
 0x51f   :  { %v753_v12 = vmul.f32 %v868_v9, %v752_v47 }
 0x521   :  { %v754_v14 = vadd.f32 %v868_v9, %v753_v12 }
 0x523   :  { %v758_v6 = vsel %vm757_vm12, %v868_v9, %v754_v14 }
 0x524   :  { %v763_v49 = vsel %vm760_vm13, %v762_v15, %v758_v6 }
 0x525   :  { %v765_v16 = vmul.f32 %v763_v49, %v744_v4 }
 0x527   :  { %802 = vmatmul.f32.vlgmr.msra.gmra.mxu3 %v765_v16 }
 0x5aa   :  { %v803_v18 = vpop.f32.mrf.mxu3 }
 0x5ab   :  { %v804_v19 = vadd.f32 %v844_v17, %v803_v18 }
 0x5ad   :  { %807 = vst.msk [vmem:[%s1378_s13] sm:$0xff] %vm806_vm14, %v804_v19 }

</bundles_post_ra>
